<compile_context>
chip_gen: v5e
topology: v5e:2x2
jax: 0.10.0
libtpu: 0.0.40
codegen_flags: <defaults>
</compile_context>

<pallas_src>
import jax
import jax.numpy as jnp
from jax import lax
from jax.experimental import pallas as pl
from jax.experimental.pallas import tpu as pltpu


def _round_up(x, m):
    return ((x + m - 1) // m) * m


def _sublane(dtype):
    """Minimum second-to-last tile dim for a dtype (8 f32 / 16 bf16 / 32 int8)."""
    return max(8, 32 // jnp.dtype(dtype).itemsize)


def _pick_reduce_tile(kp, max_tile, mult=128):
    """TK: the full Kp if it fits, else the largest multiple of `mult`
    <= max_tile that divides Kp exactly (no zero-MAC inflation of Kp)."""
    if kp <= max_tile:
        return kp
    best = mult
    t = mult
    while t <= max_tile:
        if kp % t == 0:
            best = t
        t += mult
    return best


def _pick_m_tile(m, want, mult, min_blocks=2):
    """Output-axis tile: multiple of `mult`, <= want, and (when possible)
    giving at least `min_blocks` grid blocks so both v7x TensorCores get work."""
    m_al = _round_up(m, mult)
    tm = max(mult, min(_round_up(want, mult), m_al))
    if m_al // tm < min_blocks and m_al >= min_blocks * mult:
        tm = _round_up(-(-m_al // min_blocks), mult)     # cdiv, re-aligned
    return tm


def _gemm_bias_relu_kernel(lhs_ref, rhs_ref, b_ref, o_ref):
    """Single-K-step GEMM + bias + ReLU (whole reduction in one MXU dot).
    No accumulator scratch, no pl.when branches."""
    acc = jnp.dot(lhs_ref[...], rhs_ref[...], preferred_element_type=jnp.float32)
    o_ref[...] = jnp.maximum(acc + b_ref[...], 0.0).astype(o_ref.dtype)


def _gemm_bias_relu_acc_kernel(lhs_ref, rhs_ref, b_ref, o_ref):
    """Multi-K-step GEMM: accumulate straight into the k-invariant f32 output
    block (VMEM-resident across the reduction axis); bias + ReLU on last step."""
    k = pl.program_id(1)
    acc = jnp.dot(lhs_ref[...], rhs_ref[...], preferred_element_type=jnp.float32)

    @pl.when(k == 0)
    def _():
        o_ref[...] = acc

    @pl.when(k != 0)
    def _():
        o_ref[...] = o_ref[...] + acc

    @pl.when(k == pl.num_programs(1) - 1)
    def _():
        o_ref[...] = jnp.maximum(o_ref[...] + b_ref[...], 0.0)


def conv_layer_forward(x_nchw, w_oihw, bias, *, stride, padding,
                       compute_dtype=jnp.bfloat16, out_dtype=None,
                       tm=1024, tk=2048):
    """Equivalent of F.relu(nn.Conv2d(...)(x)) for NCHW input / OIHW weights."""
    N, Cin, H, W = x_nchw.shape
    Cout, Cin_w, KH, KW = w_oihw.shape
    assert Cin == Cin_w
    if out_dtype is None:
        out_dtype = x_nchw.dtype

    # ---- wrapper glue (pure layout): pad + unfold the NCHW input ----
    x = x_nchw.astype(compute_dtype)                     # cast before materializing
    x = jnp.pad(x, ((0, 0), (0, 0), (padding, padding), (padding, padding)))
    Hp, Wp = H + 2 * padding, W + 2 * padding
    Hout = (Hp - KH) // stride + 1
    Wout = (Wp - KW) // stride + 1

    taps = []
    for kh in range(KH):
        for kw in range(KW):
            taps.append(x[:, :, kh:kh + (Hout - 1) * stride + 1:stride,
                             kw:kw + (Wout - 1) * stride + 1:stride])
    # (N, Cin, KH*KW, Hout, Wout); K ordering = (ci, kh, kw), which matches
    # w_oihw.reshape(Cout, Cin*KH*KW) with NO weight transpose.
    stacked = jnp.stack(taps, axis=2)
    K = Cin * KH * KW
    M = N * Hout * Wout

    Kp = _round_up(K, 128)
    TK = _pick_reduce_tile(Kp, tk)
    nk = Kp // TK
    kernel_out_dtype = jnp.dtype(jnp.float32) if nk > 1 else jnp.dtype(out_dtype)
    kernel = _gemm_bias_relu_acc_kernel if nk > 1 else _gemm_bias_relu_kernel
    sub = max(_sublane(compute_dtype), _sublane(kernel_out_dtype))

    w2 = w_oihw.reshape(Cout, K).astype(compute_dtype)   # (Cout, K)
    b1 = bias.astype(jnp.float32)

    transposed = Cout < 128        # small Cout: keep M on the output lane axis
    if transposed:
        # out(Coutp, Mp) = W(Coutp, Kp) @ P(Kp, Mp)
        Coutp = _round_up(Cout, sub)
        TM = _pick_m_tile(M, tm, 128)
        Mp = _round_up(M, TM)

        lhs = jnp.pad(w2, ((0, Coutp - Cout), (0, Kp - K)))              # (Coutp, Kp)
        rhs = stacked.transpose(1, 2, 0, 3, 4).reshape(K, M)
        rhs = jnp.pad(rhs, ((0, Kp - K), (0, Mp - M)))                   # (Kp, Mp)
        b2 = jnp.pad(b1.reshape(Cout, 1), ((0, Coutp - Cout), (0, 0)))   # (Coutp, 1)

        grid = (Mp // TM, nk)
        in_specs = [
            pl.BlockSpec((Coutp, TK), lambda i, k: (0, k)),   # weight (resident if nk==1)
            pl.BlockSpec((TK, TM), lambda i, k: (k, i)),      # patches
            pl.BlockSpec((Coutp, 1), lambda i, k: (0, 0)),    # bias (replicated)
        ]
        out_spec = pl.BlockSpec((Coutp, TM), lambda i, k: (0, i))
        out_shape = jax.ShapeDtypeStruct((Coutp, Mp), kernel_out_dtype)
        lhs_elems, rhs_elems, out_elems = Coutp * TK, TK * TM, Coutp * TM
    else:
        # out(Mp, Coutp) = P(Mp, Kp) @ W(Kp, Coutp)   (Cout >= 128, lane-dense)
        Coutp = _round_up(Cout, 128)
        TM = _pick_m_tile(M, tm, sub)
        Mp = _round_up(M, TM)

        lhs = stacked.transpose(0, 3, 4, 1, 2).reshape(M, K)
        lhs = jnp.pad(lhs, ((0, Mp - M), (0, Kp - K)))                   # (Mp, Kp)
        rhs = jnp.pad(w2.T, ((0, Kp - K), (0, Coutp - Cout)))            # (Kp, Coutp)
        b2 = jnp.pad(b1.reshape(1, Cout), ((0, 0), (0, Coutp - Cout)))   # (1, Coutp)

        grid = (Mp // TM, nk)
        in_specs = [
            pl.BlockSpec((TM, TK), lambda i, k: (i, k)),      # patches
            pl.BlockSpec((TK, Coutp), lambda i, k: (k, 0)),   # weight
            pl.BlockSpec((1, Coutp), lambda i, k: (0, 0)),    # bias (replicated)
        ]
        out_spec = pl.BlockSpec((TM, Coutp), lambda i, k: (i, 0))
        out_shape = jax.ShapeDtypeStruct((Mp, Coutp), kernel_out_dtype)
        lhs_elems, rhs_elems, out_elems = TM * TK, TK * Coutp, TM * Coutp

    # Explicit VMEM budget: double-buffered inputs + double-buffered output
    # + headroom (v5e scoped default is 16 MiB, v7x physical VMEM is 64 MiB).
    cbytes = jnp.dtype(compute_dtype).itemsize
    obytes = kernel_out_dtype.itemsize
    vmem_need = (2 * (lhs_elems + rhs_elems) * cbytes
                 + 2 * b2.size * 4 + 2 * out_elems * obytes)
    vmem_limit = int(min(max(vmem_need + (2 << 20), 8 << 20), 64 << 20))

    out = pl.pallas_call(
        kernel,
        out_shape=out_shape,
        grid=grid,
        in_specs=in_specs,
        out_specs=out_spec,
        compiler_params=pltpu.CompilerParams(
            dimension_semantics=("parallel", "arbitrary"),
            vmem_limit_bytes=vmem_limit),
    )(lhs, rhs, b2)

    # ---- unpad, back to NCHW (PyTorch layout) ----
    if transposed:
        out = out[:Cout, :M].reshape(Cout, N, Hout, Wout).transpose(1, 0, 2, 3)
    else:
        out = out[:M, :Cout].reshape(N, Hout, Wout, Cout).transpose(0, 3, 1, 2)
    return out.astype(out_dtype)


def _reference(x, w, b, *, stride, padding):
    ref = lax.conv_general_dilated(
        x, w, window_strides=(stride, stride),
        padding=[(padding, padding), (padding, padding)],
        dimension_numbers=("NCHW", "OIHW", "NCHW"))
    return jnp.maximum(ref + b.reshape(1, -1, 1, 1), 0.0)


if __name__ == "__main__":
    # Shapes consistent with ConvLayer.forward:
    #   x: (batch=2, in_channels=4, H=16, W=16)
    #   Conv2d(in=4, out=8, kernel_size=3, stride=1, padding=1) + ReLU
    key = jax.random.PRNGKey(0)
    kx, kw, kb, kw2, kb2 = jax.random.split(key, 5)

    N, Cin, H, W = 2, 4, 16, 16
    Cout, KH, KW = 8, 3, 3

    x = jax.random.normal(kx, (N, Cin, H, W), dtype=jnp.float32)
    fan_in = Cin * KH * KW
    bound = 1.0 / (fan_in ** 0.5)
    w = jax.random.uniform(kw, (Cout, Cin, KH, KW), jnp.float32,
                           minval=-bound, maxval=bound)
    b = jax.random.uniform(kb, (Cout,), jnp.float32, minval=-bound, maxval=bound)

    # 1) demo config: bf16 MXU operands, f32 accumulation (default).
    out = jax.block_until_ready(conv_layer_forward(x, w, b, stride=1, padding=1))
    ref = _reference(x, w, b, stride=1, padding=1)
    assert out.shape == (N, Cout, H, W), out.shape
    assert jnp.allclose(out, ref, atol=5e-2, rtol=5e-2), \
        float(jnp.max(jnp.abs(out - ref)))

    # 2) same config with f32 operands -> matches the XLA conv tightly.
    out_f32 = jax.block_until_ready(
        conv_layer_forward(x, w, b, stride=1, padding=1,
                           compute_dtype=jnp.float32))
    assert jnp.allclose(out_f32, ref, atol=1e-3, rtol=1e-3), \
        float(jnp.max(jnp.abs(out_f32 - ref)))

    # 3) stride=2 sanity check (stride handled by the wrapper slicing).
    out2 = jax.block_until_ready(conv_layer_forward(x, w, b, stride=2, padding=1))
    ref2 = _reference(x, w, b, stride=2, padding=1)
    assert out2.shape == ref2.shape, (out2.shape, ref2.shape)
    assert jnp.allclose(out2, ref2, atol=5e-2, rtol=5e-2), \
        float(jnp.max(jnp.abs(out2 - ref2)))

    # 4) Cout >= 128 path (lane-dense (M, Cout) orientation).
    Cout_big = 128
    wb = jax.random.uniform(kw2, (Cout_big, Cin, KH, KW), jnp.float32,
                            minval=-bound, maxval=bound)
    bb = jax.random.uniform(kb2, (Cout_big,), jnp.float32,
                            minval=-bound, maxval=bound)
    out3 = jax.block_until_ready(conv_layer_forward(x, wb, bb, stride=1, padding=1))
    ref3 = _reference(x, wb, bb, stride=1, padding=1)
    assert out3.shape == ref3.shape, (out3.shape, ref3.shape)
    assert jnp.allclose(out3, ref3, atol=5e-2, rtol=5e-2), \
        float(jnp.max(jnp.abs(out3 - ref3)))

    # 5) multi-K-step path (K > 128, forced small TK), f32 operands.
    Cin_big = 16
    x5 = jax.random.normal(kx, (N, Cin_big, H, W), dtype=jnp.float32)
    bnd5 = 1.0 / ((Cin_big * KH * KW) ** 0.5)
    w5 = jax.random.uniform(kw, (Cout, Cin_big, KH, KW), jnp.float32,
                            minval=-bnd5, maxval=bnd5)
    out5 = jax.block_until_ready(
        conv_layer_forward(x5, w5, b, stride=1, padding=1,
                           compute_dtype=jnp.float32, tk=128))
    ref5 = _reference(x5, w5, b, stride=1, padding=1)
    assert jnp.allclose(out5, ref5, atol=1e-3, rtol=1e-3), \
        float(jnp.max(jnp.abs(out5 - ref5)))

    print("KERNEL_OK")
</pallas_src>

<mosaic_0001>
module attributes {stable_mosaic.version = 11 : i64} {
  func.func @_gemm_bias_relu_kernel(%arg0: i32, %arg1: i32, %arg2: memref<16x128xbf16, #tpu.memory_space<vmem>>, %arg3: memref<128x256xbf16, #tpu.memory_space<vmem>>, %arg4: memref<16x1xf32, #tpu.memory_space<vmem>>, %arg5: memref<16x256xf32, #tpu.memory_space<vmem>>) attributes {dimension_semantics = [#tpu.dimension_semantics<parallel>, #tpu.dimension_semantics<arbitrary>], iteration_bounds = array<i64: 2, 1>, scalar_prefetch = 0 : i64, scratch_operands = 0 : i64, tpu.core_type = #tpu.core_type<tc>, window_params = [{transform_indices = @transform_0, window_bounds = array<i64: 16, 128>}, {transform_indices = @transform_1, window_bounds = array<i64: 128, 256>}, {pipeline_mode = #tpu.pipeline_mode<synchronous>, transform_indices = @transform_2, window_bounds = array<i64: 16, 1>}, {transform_indices = @transform_3, window_bounds = array<i64: 16, 256>}]} {
    %c0 = arith.constant 0 : index
    %c0_0 = arith.constant 0 : index
    %0 = vector.load %arg2[%c0, %c0_0] : memref<16x128xbf16, #tpu.memory_space<vmem>>, vector<16x128xbf16>
    %c0_1 = arith.constant 0 : index
    %c0_2 = arith.constant 0 : index
    %1 = vector.load %arg3[%c0_1, %c0_2] : memref<128x256xbf16, #tpu.memory_space<vmem>>, vector<128x256xbf16>
    %cst = arith.constant dense<0.000000e+00> : vector<16x256xf32>
    %2 = tpu.matmul %0, %1, %cst {dimension_numbers = #tpu.dot_dimension_numbers<[1], [0], [0], [1], [0, 0, 1, 1], [], []>} : vector<16x128xbf16>, vector<128x256xbf16>, vector<16x256xf32> -> vector<16x256xf32>
    %c0_3 = arith.constant 0 : index
    %c0_4 = arith.constant 0 : index
    %3 = vector.load %arg4[%c0_3, %c0_4] : memref<16x1xf32, #tpu.memory_space<vmem>>, vector<16x1xf32>
    %4 = vector.broadcast %3 : vector<16x1xf32> to vector<16x256xf32>
    %5 = arith.addf %2, %4 : vector<16x256xf32>
    %cst_5 = arith.constant 0.000000e+00 : f32
    %6 = vector.broadcast %cst_5 : f32 to vector<16x256xf32>
    %7 = arith.maximumf %5, %6 : vector<16x256xf32>
    %c0_6 = arith.constant 0 : index
    %c0_7 = arith.constant 0 : index
    %8 = vector.load %arg5[%c0_6, %c0_7] : memref<16x256xf32, #tpu.memory_space<vmem>>, vector<16x256xf32>
    tpu.vector_store %arg5[%c0_6, %c0_7], %7 {strides = array<i32>} : memref<16x256xf32, #tpu.memory_space<vmem>>, vector<16x256xf32>,
    return
  }
  func.func @transform_0(%arg0: i32, %arg1: i32) -> (i32, i32) {
    %c0_i32 = arith.constant 0 : i32
    %c0_i32_0 = arith.constant 0 : i32
    return %c0_i32, %arg1 : i32, i32
  }
  func.func @transform_1(%arg0: i32, %arg1: i32) -> (i32, i32) {
    %c0_i32 = arith.constant 0 : i32
    return %arg1, %arg0 : i32, i32
  }
  func.func @transform_2(%arg0: i32, %arg1: i32) -> (i32, i32) {
    %c0_i32 = arith.constant 0 : i32
    %c0_i32_0 = arith.constant 0 : i32
    %c0_i32_1 = arith.constant 0 : i32
    return %c0_i32, %c0_i32_0 : i32, i32
  }
  func.func @transform_3(%arg0: i32, %arg1: i32) -> (i32, i32) {
    %c0_i32 = arith.constant 0 : i32
    %c0_i32_0 = arith.constant 0 : i32
    return %c0_i32, %arg0 : i32, i32
  }
}

</mosaic_0001>

<bundles_post_ra>
// kernel: tpu_custom_call.1
= control target key start
LH: loop header
LB: loop body
LE: loop exit
PB: predicated region body
PF: predicated region fallthrough
CT: control target
= control target key end

     0   :  { %8 = vsyncpa [#allocation3], 0  ;;  %s973_s0 = inlined_call_operand.vmem [shape: bf16[16,128], index: 0, kind: input, shape index: {}]   ;;  %s974_s1 = inlined_call_operand.hbm [shape: bf16[128,512], index: 1, kind: input, shape index: {}]   ;;  %s975_s2 = inlined_call_operand.vmem [shape: f32[16,1], index: 2, kind: input, shape index: {}]   ;;  %s976_s3 = inlined_call_operand.hbm [shape: f32[16,512], index: 3, kind: output, shape index: {}]  }
   0x1   :  { %10 = vsyncpa [#allocation3 + $0x1], 0 }
   0x2   :  { %11 = vsyncpa [#allocation4], 0 }
   0x3   :  { %13 = vsyncpa [#allocation4 + $0x1], 0  ;;  %s809_s12 = smov 0   ;;  %s811_s13 = smov 0  }
   0x4   :  { %s813_s14 = smov 0   ;;  %s815_s15 = smov 0  }
   0x5   :  { %s817_s16 = smov 0   ;;  %s819_s17 = smov 0  }
   0x6 LB: > { %s495_s18 = sadd.s32 4294967295, %s780_s17   ;;  %s496_s19 = sadd.s32 4294967294, %s780_s17   ;;  %s780_s17 = sphi %s819_s17, %s19_s17   ;;  %s776_s16 = sphi %s817_s16, %s985_s16   ;;  %s772_s15 = sphi %s815_s15, %s984_s15   ;;  %s768_s14 = sphi %s813_s14, %s983_s14   ;;  %s764_s13 = sphi %s811_s13, %s982_s13   ;;  %s760_s12 = sphi %s809_s12, %s981_s12  }
   0x7   : > { %s31_s20 = sadd.s32 1, %s776_s16  ;;  %s66_s21 = sadd.s32 1, %s768_s14 }
   0x8   : > { %p33_p0 = scmp.ge.s32.totalorder %s31_s20, 2  ;;  %p73_p1 = scmp.ne.s32.totalorder %s768_s14, %s764_s13 }
   0x9   : > { %p74_p2 = scmp.eq.s32.totalorder %s780_s17, 0  ;;  %p79_p3 = scmp.ne.s32.totalorder %s764_s13, %s760_s12 }
   0xa   : > { %s987_s20 = smov (%p33_p0, %s31_s20), 0  ;;  %p80_p5 = scmp.eq.s32.totalorder %s495_s18, 0 }
   0xb   : > { %p850_p4 = por %p74_p2, %p73_p1  ;;  %s62_s23 = ssub.s32 %s776_s16, %s987_s20 }
   0xc   : > { %p124_p6 = scmp.eq.s32.totalorder %s495_s18, 1  ;;  %p64_p7 = scmp.eq.s32.totalorder %s62_s23, 0 }
   0xd   : > { %p856_p8 = por %p80_p5, %p79_p3  ;;  %p130_p10 = scmp.eq.s32.totalorder %s496_s19, 1 }
   0xe   : > { %p860_p9 = por %p124_p6, %p73_p1  ;;  %p499_p12 = scmp.ge.s32.totalorder %s780_s17, 2 }
   0xf   : > { %s865_s26 = scalar_select %p64_p7, %s768_s14, %s66_s21  }
  0x10   : > { %p867_p11 = por %p130_p10, %p79_p3  ;;  %p610_p13 = scmp.lt.s32.totalorder %s780_s17, 2 }
  0x11   : > { %s160_s28 = sand.u32 1, %s768_s14   ;;  %s579_s30 = sshll.u32 %s776_s16, 3 }
  0x12   : > { %s500_s29 = sshll.u32 %s160_s28, 7  ;;  %s172_s6 = scalar_lea.hbm %s974_s1, %s579_s30 }
  0x13   : > { %s164_s7 = scalar_lea.vmem [#allocation2], %s500_s29  ;;  %s173_s9 = sshll.u32 %s172_s6, 4  ;;  %s174_s9 = int_to_ptr.hbm [resolvable:$true] %s173_s9 }
  0x14   : > { %s175_s8 = sshll.u32 %s164_s7, 4  ;;  %p603_p0 = pnand %p610_p13, %p850_p4  ;;  %s176_s8 = int_to_ptr.vmem [resolvable:$true] %s175_s8 }
  0x15   : > { %s161_s10 = scalar_lea.sflag [#allocation3], %s160_s28  ;;  %s782_s11 = smov 256  }
  0x16   : > { %s783_s18 = smov 128   ;;  %s784_s19 = smov 8  }
  0x17   : > { %605 = dma.hbm_to_vmem [thread:$0]  (!%p603_p0), %s174_s9, 2048, %s176_s8, %s161_s10, %s782_s11, %s783_s18, %s784_s19  }
  0x18   : > { %p503_p1 = scmp.ge.s32.totalorder %s780_s17, 1  ;;  %p183_p2 = scmp.lt.s32.totalorder %s780_s17, 3 }
  0x1a   : > { %p184_p3 = pnand %p503_p1, %p183_p2 }
  0x1b   : > { %s883_s21 = sand.u32 (!%p184_p3), 1, %s764_s13  }
  0x1c   : > { %187 = sbr.rel (%p184_p3) target bundleno = 212 (0xd4), region = 32  ;;  %s504_s23 = sshll.u32 (!%p184_p3), %s883_s21, 7 }
  0x1d   : > { %s190_s29 = scalar_lea.sflag (!%p184_p3), [#allocation3], %s883_s21  ;;  %s887_s30 = scalar_lea.vmem (!%p184_p3), [#allocation2], %s504_s23 }
  0x21   : > { %751 = dma.done.wait (%p856_p8), %s190_s29, 2048  }
  0x22   : > { %753 = vsyncadd (%p856_p8), %s190_s29, 4294965248  ;;  %v568_v0 = vld [vmem:[%s887_s30 + $0x70] sm:$0xf]  ;;  %v596_v1 = vld [vmem:[%s887_s30 + $0x74] sm:$0xf0]  ;;  %v785_v23 = vmov 0  }
  0x23   : > { %v595_v2 = vld [vmem:[%s887_s30 + $0x74] sm:$0xf]  ;;  %v569_v3 = vor.u32 %v596_v1, %v568_v0  ;;  %v570_v4 = vld [vmem:[%s887_s30 + $0x78] sm:$0xf0]  ;;  %v560_v5 = vld [vmem:[%s887_s30 + $0x60] sm:$0xf]  ;;  %667 = vset.pattern.permute.xlu0 %v785_v23 }
  0x24   : > { %v594_v6 = vld [vmem:[%s887_s30 + $0x64] sm:$0xf0]  ;;  %v573_v7 = vor.u32 %v595_v2, %v570_v4  ;;  %v593_v8 = vld [vmem:[%s887_s30 + $0x64] sm:$0xf]  ;;  %v562_v9 = vld [vmem:[%s887_s30 + $0x68] sm:$0xf0] }
  0x25   : > { %344 = vmatpush.bf16.msra.mxu0 %v569_v3  ;;  %v561_v10 = vor.u32 %v594_v6, %v560_v5  ;;  %v565_v11 = vor.u32 %v593_v8, %v562_v9  ;;  %v552_v12 = vld [vmem:[%s887_s30 + $0x50] sm:$0xf]  ;;  %v592_v13 = vld [vmem:[%s887_s30 + $0x54] sm:$0xf0]  ;;  %v591_v14 = vld [vmem:[%s887_s30 + $0x54] sm:$0xf] }
  0x26   : > { %358 = vmatpush.bf16.msra.mxu1 %v573_v7  ;;  %v554_v15 = vld [vmem:[%s887_s30 + $0x58] sm:$0xf0]  ;;  %v553_v16 = vor.u32 %v592_v13, %v552_v12  ;;  %v544_v18 = vld [vmem:[%s887_s30 + $0x40] sm:$0xf]  ;;  %v590_v19 = vld [vmem:[%s887_s30 + $0x44] sm:$0xf0] }
  0x27   : > { %v557_v17 = vor.u32 %v591_v14, %v554_v15  ;;  %v589_v20 = vld [vmem:[%s887_s30 + $0x44] sm:$0xf]  ;;  %v546_v21 = vld [vmem:[%s887_s30 + $0x48] sm:$0xf0]  ;;  %v545_v22 = vor.u32 %v590_v19, %v544_v18  ;;  %v536_v26 = vld [vmem:[%s887_s30 + $0x30] sm:$0xf] }
  0x28   : > { %v246_v24 = vld [vmem:[%s975_s2] sm:$0xff]  ;;  %v549_v25 = vor.u32 %v589_v20, %v546_v21  ;;  %v588_v27 = vld [vmem:[%s887_s30 + $0x34] sm:$0xf0]  ;;  %v587_v28 = vld [vmem:[%s887_s30 + $0x34] sm:$0xf]  ;;  %s505_s7 = sshll.u32 %s883_s21, 5 }
  0x29   : > { %345 = vmatpush.bf16.msra.mxu0 %v561_v10  ;;  %250 = vperm.xlu0 %667, %v246_v24   ;;  %v538_v29 = vld [vmem:[%s887_s30 + $0x38] sm:$0xf0]  ;;  %v537_v30 = vor.u32 %v588_v27, %v536_v26  ;;  %v528_v32 = vld [vmem:[%s887_s30 + $0x20] sm:$0xf]  ;;  %v586_v33 = vld [vmem:[%s887_s30 + $0x24] sm:$0xf0] }
  0x2a   : > { %359 = vmatpush.bf16.msra.mxu1 %v565_v11  ;;  %v541_v31 = vor.u32 %v587_v28, %v538_v29  ;;  %v585_v34 = vld [vmem:[%s887_s30 + $0x24] sm:$0xf]  ;;  %v530_v35 = vld [vmem:[%s887_s30 + $0x28] sm:$0xf0]  ;;  %v529_v37 = vor.u32 %v586_v33, %v528_v32  ;;  %v520_v39 = vld [vmem:[%s887_s30 + $0x10] sm:$0xf] }
  0x2b   : > { %v247_v36 = vld [vmem:[%s975_s2 + $0x8] sm:$0xff]  ;;  %v533_v38 = vor.u32 %v585_v34, %v530_v35  ;;  %v584_v40 = vld [vmem:[%s887_s30 + $0x14] sm:$0xf0]  ;;  %v583_v41 = vld [vmem:[%s887_s30 + $0x14] sm:$0xf]  ;;  %s597_s8 = sshll.u32 %s772_s15, 4 }
  0x2c   : > { %v522_v42 = vld [vmem:[%s887_s30 + $0x18] sm:$0xf0]  ;;  %v521_v43 = vor.u32 %v584_v40, %v520_v39  ;;  %v512_v45 = vld [vmem:[%s887_s30] sm:$0xf]  ;;  %v582_v46 = vld [vmem:[%s887_s30 + $0x4] sm:$0xf0]  ;;  %s392_s18 = scalar_lea.hbm %s976_s3, %s597_s8 }
  0x2d   : > { %346 = vmatpush.bf16.msra.mxu0 %v553_v16  ;;  %v525_v44 = vor.u32 %v583_v41, %v522_v42  ;;  %v581_v47 = vld [vmem:[%s887_s30 + $0x4] sm:$0xf]  ;;  %v514_v48 = vld [vmem:[%s887_s30 + $0x8] sm:$0xf0]  ;;  %v513_v49 = vor.u32 %v582_v46, %v512_v45  ;;  %s220_s9 = scalar_lea.vmem [#allocation5], %s505_s7  ;;  %s395_s23 = sshll.u32 %s392_s18, 4  ;;  %s396_s23 = int_to_ptr.hbm [resolvable:$true] %s395_s23 }
  0x2e   : > { %360 = vmatpush.bf16.msra.mxu1 %v557_v17  ;;  %v517_v50 = vor.u32 %v581_v47, %v514_v48  ;;  %v580_v51 = vld [vmem:[%s973_s0] sm:$0xff]  ;;  %s393_s19 = sshll.u32 %s220_s9, 4  ;;  %s381_s15 = scalar_lea.sflag [#allocation4], %s883_s21  ;;  %s394_s19 = int_to_ptr.vmem [resolvable:$true] %s393_s19 }
  0x2f   : > { %s712_s29 = sshra.s32 %s396_s23, 4  ;;  %s718_s28 = scalar_lea.hbm %s976_s3, 64  ;;  %s713_s29 = int_to_ptr.hbm [resolvable:$true] %s712_s29 }
  0x30   : > { %s714_s30 = scalar_lea.hbm %s713_s29, 32  ;;  %p719_p7 = scmp.lt.s32.totalorder %s713_s29, %s976_s3 }
  0x31   : > { %347 = vmatpush.bf16.msra.mxu0 %v545_v22  ;;  %255 = vperm.xlu0 %667, %v247_v36   ;;  %p715_p4 = scmp.ne.s32.totalorder %s713_s29, %s714_s30  ;;  %p720_p8 = scmp.lt.s32.totalorder %s718_s28, %s714_s30 }
  0x32   : > { %361 = vmatpush.bf16.msra.mxu1 %v549_v25 }
  0x33   : > { %p716_p5 = pnand %p715_p4, %p860_p9  ;;  %p721_p10 = por %p720_p8, %p719_p7 }
  0x35   : > { %348 = vmatpush.bf16.msra.mxu0 %v537_v30  ;;  %p717_p6 = pneg %p716_p5 }
  0x36   : > { %362 = vmatpush.bf16.msra.mxu1 %v541_v31 }
  0x37   : > { %p722_p13 = pnand %p721_p10, %p717_p6 }
  0x39   : > { %349 = vmatpush.bf16.msra.mxu0 %v529_v37 }
  0x3a   : > { %363 = vmatpush.bf16.msra.mxu1 %v533_v38 }
  0x3d   : > { %350 = vmatpush.bf16.msra.mxu0 %v521_v43 }
  0x3e   : > { %364 = vmatpush.bf16.msra.mxu1 %v525_v44 }
  0x41   : > { %351 = vmatpush.bf16.msra.mxu0 %v513_v49 }
  0x42   : > { %365 = vmatpush.bf16.msra.mxu1 %v517_v50 }
  0x44   : > { %352 = vmatmul.bf16.vlgmr.msra.gmra.mxu0 %v580_v51 }
  0x45   : > { %366 = vmatmul.bf16.vlgmr.msra.gmra.mxu1 %v580_v51 }
  0x9b   : > { %v251_v52 = vpop.permute.xlu0 %250 }
  0xa3   : > { %v256_v59 = vpop.permute.xlu0 %255 }
  0xc1   : > { %v353_v53 = vpop.f32.mrf.mxu0 }
  0xc2   : > { %v354_v54 = vadd.f32 %v353_v53, %v251_v52  ;;  %v367_v55 = vpop.f32.mrf.mxu1 }
  0xc3   : > { %v368_v56 = vadd.f32 %v367_v55, %v251_v52 }
  0xc4   : > { %v372_v57 = vmax.f32 %v354_v54, 0.0 }
  0xc5   : > { %v373_v58 = vmax.f32 %v368_v56, 0.0 }
  0xc6   : > { %376 = vst [vmem:[%s220_s9] sm:$0xff] %v372_v57 }
  0xc7   : > { %377 = vst [vmem:[%s220_s9 + $0x8] sm:$0xff] %v373_v58 }
  0xc9   : > { %v355_v60 = vpop.f32.mrf.mxu0 }
  0xca   : > { %v356_v61 = vadd.f32 %v355_v60, %v256_v59  ;;  %v369_v62 = vpop.f32.mrf.mxu1 }
  0xcb   : > { %v370_v63 = vadd.f32 %v369_v62, %v256_v59 }
  0xcc   : > { %v374_v0 = vmax.f32 %v356_v61, 0.0 }
  0xcd   : > { %v375_v1 = vmax.f32 %v370_v63, 0.0 }
  0xce   : > { %378 = vst [vmem:[%s220_s9 + $0x10] sm:$0xff] %v374_v0 }
  0xcf   : > { %379 = vst [vmem:[%s220_s9 + $0x18] sm:$0xff] %v375_v1 }
  0xd0   : > { %725 = shalt.err (!%p722_p13)
}
  0xd1   : > { %s786_s21 = smov 256   ;;  %s787_s6 = smov 512  }
  0xd2   : > { %s788_s7 = smov 16  }
  0xd3   : > { %600 = dma.vmem_to_hbm [thread:$0]  (%p860_p9), %s394_s19, 512, %s396_s23, %s381_s15, %s786_s21, %s787_s6, %s788_s7  }
  0xd4 PF: > { %s410_s8 = sand.u32 1, %s760_s12   ;;  %p607_p0 = pnand %p499_p12, %p867_p11 }
  0xd5   : > { %s411_s9 = scalar_lea.sflag [#allocation4], %s410_s8 }
  0xd6   : > { %p608_p1 = pneg %p607_p0 }
  0xd8   : > { %755 = dma.done.wait (%p608_p1), %s411_s9, 512  }
  0xd9   : > { %757 = vsyncadd (%p608_p1), %s411_s9, 4294966784  ;;  %s19_s17 = sadd.s32 1, %s780_s17   ;;  %s981_s12 = smov %s764_s13 }
  0xda   : > { %p16_p2 = scmp.ge.s32.totalorder %s19_s17, 4   ;;  %s982_s13 = smov %s768_s14 }
  0xdb   : > { %s983_s14 = smov %s865_s26  ;;  %s984_s15 = smov %s776_s16 }
  0xdc   : > { %s985_s16 = smov %s987_s20  ;;  %18 = sbr.rel (!%p16_p2) target bundleno = 6 (0x6), region = 80 }
  0xe1   :  { %417 = vsyncpa [#allocation3], 1 }
  0xe2   :  { %419 = vsyncpa [#allocation3 + $0x1], 1 }
  0xe3   :  { %420 = vsyncpa [#allocation4], 1 }
  0xe4   :  { %422 = vsyncpa [#allocation4 + $0x1], 1 }

</bundles_post_ra>
